<compile_context>
chip_gen: v6e
topology: v6e:2x2x1
jax: 0.10.0
libtpu: 0.0.40
codegen_flags: <defaults>
</compile_context>

<pallas_src>
import jax
import jax.numpy as jnp
from jax.experimental import pallas as pl
from jax.experimental.pallas import tpu as pltpu

_LANE = 128
_SUBLANE = 8
_HIDDEN = 128
_NEG_MASK = -1e30


def _round_up(n, m):
    return ((n + m - 1) // m) * m


def _policy_kernel(x_ref, w1_ref, b1_ref, w2_ref, b2_ref, w3_ref, b3_ref, out_ref):
    x = x_ref[...]                                                  # (TB, S_pad) bf16

    # fc1 + relu  (bf16 x bf16 -> f32 accumulate, epilogue in f32)
    h1 = jnp.dot(x, w1_ref[...], preferred_element_type=jnp.float32) + b1_ref[...]
    h1 = jnp.maximum(h1, 0.0)

    # dropout(p=0.2) -> identity at inference

    # fc2 + relu
    h2 = jnp.dot(h1.astype(jnp.bfloat16), w2_ref[...],
                 preferred_element_type=jnp.float32) + b2_ref[...]
    h2 = jnp.maximum(h2, 0.0)

    # fc3 + softmax over the (padded) action dim.  Padded lanes carry a -1e30
    # bias, so exp() maps them to 0 and they vanish from the normalization.
    logits = jnp.dot(h2.astype(jnp.bfloat16), w3_ref[...],
                     preferred_element_type=jnp.float32) + b3_ref[...]
    m = jnp.max(logits, axis=1, keepdims=True)
    e = jnp.exp(logits - m)
    denom = jnp.sum(e, axis=1, keepdims=True)
    out_ref[...] = (e * pl.reciprocal(denom, approx=True)).astype(out_ref.dtype)


def _pad_cast_params(params):
    """Pad feature dims to lane width; weights -> bf16, biases stay f32."""
    w1, b1 = params["w1"], params["b1"]
    w2, b2 = params["w2"], params["b2"]
    w3, b3 = params["w3"], params["b3"]
    S, H = w1.shape
    A = w3.shape[1]
    S_pad = _round_up(S, _LANE)
    A_pad = _round_up(A, _LANE)

    w1p = jnp.pad(w1, ((0, S_pad - S), (0, 0))).astype(jnp.bfloat16)
    w2p = w2.astype(jnp.bfloat16)
    w3p = jnp.pad(w3, ((0, 0), (0, A_pad - A))).astype(jnp.bfloat16)
    b3p = jnp.pad(b3, ((0, 0), (0, A_pad - A)), constant_values=_NEG_MASK)
    prepared = (w1p, b1.astype(jnp.float32), w2p, b2.astype(jnp.float32),
                w3p, b3p.astype(jnp.float32))
    return prepared, (S, H, A, S_pad, A_pad)


def rl_policy_forward(x, params, *, tb=256):
    """x: (B, state_size) f32.  params: dict of (in,out) weights + (1,out) biases."""
    (w1, b1, w2, b2, w3, b3), (S, H, A, S_pad, A_pad) = _pad_cast_params(params)
    B = x.shape[0]

    # Batch tile: largest MXU-friendly tile not bigger than the (sublane-rounded)
    # batch.  Raise tb for large rollout batches; each tile is only
    # tb*(S_pad + A_pad) activation bytes so VMEM is never the limit here.
    tb = min(tb, _round_up(B, _SUBLANE))
    B_pad = _round_up(B, tb)

    x_p = jnp.pad(x, ((0, B_pad - B), (0, S_pad - S))).astype(jnp.bfloat16)

    out = pl.pallas_call(
        _policy_kernel,
        out_shape=jax.ShapeDtypeStruct((B_pad, A_pad), jnp.float32),
        grid=(B_pad // tb,),
        in_specs=[
            pl.BlockSpec((tb, S_pad), lambda i: (i, 0)),   # streamed activations
            pl.BlockSpec((S_pad, H), lambda i: (0, 0)),    # resident weights / biases
            pl.BlockSpec((1, H), lambda i: (0, 0)),
            pl.BlockSpec((H, H), lambda i: (0, 0)),
            pl.BlockSpec((1, H), lambda i: (0, 0)),
            pl.BlockSpec((H, A_pad), lambda i: (0, 0)),
            pl.BlockSpec((1, A_pad), lambda i: (0, 0)),
        ],
        out_specs=pl.BlockSpec((tb, A_pad), lambda i: (i, 0)),
        compiler_params=pltpu.CompilerParams(
            dimension_semantics=("parallel",)),
    )(x_p, w1, b1, w2, b2, w3, b3)

    return out[:B, :A]


def init_params(key, state_size, action_size, hidden=_HIDDEN):
    """Deterministic PyTorch-style init; weights stored (in, out)."""
    ks = jax.random.split(key, 6)

    def linear(kw, kb, fan_in, fan_out):
        bound = 1.0 / jnp.sqrt(fan_in)
        w = jax.random.uniform(kw, (fan_in, fan_out), jnp.float32, -bound, bound)
        b = jax.random.uniform(kb, (1, fan_out), jnp.float32, -bound, bound)
        return w, b

    w1, b1 = linear(ks[0], ks[1], state_size, hidden)
    w2, b2 = linear(ks[2], ks[3], hidden, hidden)
    w3, b3 = linear(ks[4], ks[5], hidden, action_size)
    return {"w1": w1, "b1": b1, "w2": w2, "b2": b2, "w3": w3, "b3": b3}


def _reference_matched(x, params):
    """jnp reference mirroring the kernel numerics (padding + bf16 matmuls)."""
    (w1, b1, w2, b2, w3, b3), (S, H, A, S_pad, A_pad) = _pad_cast_params(params)
    xp = jnp.pad(x, ((0, 0), (0, S_pad - S))).astype(jnp.bfloat16)
    h1 = jnp.maximum(jnp.dot(xp, w1, preferred_element_type=jnp.float32) + b1, 0.0)
    h2 = jnp.maximum(jnp.dot(h1.astype(jnp.bfloat16), w2,
                             preferred_element_type=jnp.float32) + b2, 0.0)
    logits = jnp.dot(h2.astype(jnp.bfloat16), w3,
                     preferred_element_type=jnp.float32) + b3
    return jax.nn.softmax(logits, axis=1)[:, :A]


def _reference_f32(x, p):
    h1 = jnp.maximum(x @ p["w1"] + p["b1"], 0.0)
    h2 = jnp.maximum(h1 @ p["w2"] + p["b2"], 0.0)
    return jax.nn.softmax(h2 @ p["w3"] + p["b3"], axis=1)


if __name__ == "__main__":
    key = jax.random.PRNGKey(0)
    k_x, k_p = jax.random.split(key)

    batch = 64
    state_size = 16
    action_size = 8

    x = jax.random.normal(k_x, (batch, state_size), jnp.float32)
    params = init_params(k_p, state_size, action_size)

    out = rl_policy_forward(x, params, tb=32)   # grid=(2,): pipelined batch tiles
    out = jax.block_until_ready(out)
    assert out.shape == (batch, action_size)

    # Matches the kernel's own numerics (bf16 matmuls, masked-pad softmax);
    # slack covers the approx EUP reciprocal.
    ref = _reference_matched(x, params)
    assert jnp.allclose(out, ref, atol=5e-3, rtol=1e-2), \
        float(jnp.max(jnp.abs(out - ref)))

    # Sanity vs. pure-f32 unpadded math (bf16 rounding -> loose tolerance).
    ref32 = _reference_f32(x, params)
    assert jnp.allclose(out, ref32, atol=3e-2), \
        float(jnp.max(jnp.abs(out - ref32)))

    # Probabilities sum to 1 along the action dim (approx reciprocal slack).
    assert jnp.allclose(jnp.sum(out, axis=1), 1.0, atol=5e-3)

    print("KERNEL_OK")
</pallas_src>

<mosaic_0001>
module attributes {stable_mosaic.version = 11 : i64} {
  func.func @_policy_kernel(%arg0: i32, %arg1: memref<32x128xbf16, #tpu.memory_space<vmem>>, %arg2: memref<128x128xbf16, #tpu.memory_space<vmem>>, %arg3: memref<1x128xf32, #tpu.memory_space<vmem>>, %arg4: memref<128x128xbf16, #tpu.memory_space<vmem>>, %arg5: memref<1x128xf32, #tpu.memory_space<vmem>>, %arg6: memref<128x128xbf16, #tpu.memory_space<vmem>>, %arg7: memref<1x128xf32, #tpu.memory_space<vmem>>, %arg8: memref<32x128xf32, #tpu.memory_space<vmem>>) attributes {dimension_semantics = [#tpu.dimension_semantics<parallel>], iteration_bounds = array<i64: 2>, scalar_prefetch = 0 : i64, scratch_operands = 0 : i64, tpu.core_type = #tpu.core_type<tc>, window_params = [{transform_indices = @transform_0, window_bounds = array<i64: 32, 128>}, {pipeline_mode = #tpu.pipeline_mode<synchronous>, transform_indices = @transform_1, window_bounds = array<i64: 128, 128>}, {pipeline_mode = #tpu.pipeline_mode<synchronous>, transform_indices = @transform_2, window_bounds = array<i64: 1, 128>}, {pipeline_mode = #tpu.pipeline_mode<synchronous>, transform_indices = @transform_3, window_bounds = array<i64: 128, 128>}, {pipeline_mode = #tpu.pipeline_mode<synchronous>, transform_indices = @transform_4, window_bounds = array<i64: 1, 128>}, {pipeline_mode = #tpu.pipeline_mode<synchronous>, transform_indices = @transform_5, window_bounds = array<i64: 128, 128>}, {pipeline_mode = #tpu.pipeline_mode<synchronous>, transform_indices = @transform_6, window_bounds = array<i64: 1, 128>}, {transform_indices = @transform_7, window_bounds = array<i64: 32, 128>}]} {
    %c0 = arith.constant 0 : index
    %c0_0 = arith.constant 0 : index
    %0 = vector.load %arg1[%c0, %c0_0] : memref<32x128xbf16, #tpu.memory_space<vmem>>, vector<32x128xbf16>
    %c0_1 = arith.constant 0 : index
    %c0_2 = arith.constant 0 : index
    %1 = vector.load %arg2[%c0_1, %c0_2] : memref<128x128xbf16, #tpu.memory_space<vmem>>, vector<128x128xbf16>
    %cst = arith.constant dense<0.000000e+00> : vector<32x128xf32>
    %2 = tpu.matmul %0, %1, %cst {dimension_numbers = #tpu.dot_dimension_numbers<[1], [0], [0], [1], [0, 0, 1, 1], [], []>} : vector<32x128xbf16>, vector<128x128xbf16>, vector<32x128xf32> -> vector<32x128xf32>
    %c0_3 = arith.constant 0 : index
    %c0_4 = arith.constant 0 : index
    %3 = vector.load %arg3[%c0_3, %c0_4] : memref<1x128xf32, #tpu.memory_space<vmem>>, vector<1x128xf32>
    %4 = vector.broadcast %3 : vector<1x128xf32> to vector<32x128xf32>
    %5 = arith.addf %2, %4 : vector<32x128xf32>
    %cst_5 = arith.constant 0.000000e+00 : f32
    %6 = vector.broadcast %cst_5 : f32 to vector<32x128xf32>
    %7 = arith.maximumf %5, %6 : vector<32x128xf32>
    %8 = arith.truncf %7 : vector<32x128xf32> to vector<32x128xbf16>
    %c0_6 = arith.constant 0 : index
    %c0_7 = arith.constant 0 : index
    %9 = vector.load %arg4[%c0_6, %c0_7] : memref<128x128xbf16, #tpu.memory_space<vmem>>, vector<128x128xbf16>
    %cst_8 = arith.constant dense<0.000000e+00> : vector<32x128xf32>
    %10 = tpu.matmul %8, %9, %cst_8 {dimension_numbers = #tpu.dot_dimension_numbers<[1], [0], [0], [1], [0, 0, 1, 1], [], []>} : vector<32x128xbf16>, vector<128x128xbf16>, vector<32x128xf32> -> vector<32x128xf32>
    %c0_9 = arith.constant 0 : index
    %c0_10 = arith.constant 0 : index
    %11 = vector.load %arg5[%c0_9, %c0_10] : memref<1x128xf32, #tpu.memory_space<vmem>>, vector<1x128xf32>
    %12 = vector.broadcast %11 : vector<1x128xf32> to vector<32x128xf32>
    %13 = arith.addf %10, %12 : vector<32x128xf32>
    %cst_11 = arith.constant 0.000000e+00 : f32
    %14 = vector.broadcast %cst_11 : f32 to vector<32x128xf32>
    %15 = arith.maximumf %13, %14 : vector<32x128xf32>
    %16 = arith.truncf %15 : vector<32x128xf32> to vector<32x128xbf16>
    %c0_12 = arith.constant 0 : index
    %c0_13 = arith.constant 0 : index
    %17 = vector.load %arg6[%c0_12, %c0_13] : memref<128x128xbf16, #tpu.memory_space<vmem>>, vector<128x128xbf16>
    %cst_14 = arith.constant dense<0.000000e+00> : vector<32x128xf32>
    %18 = tpu.matmul %16, %17, %cst_14 {dimension_numbers = #tpu.dot_dimension_numbers<[1], [0], [0], [1], [0, 0, 1, 1], [], []>} : vector<32x128xbf16>, vector<128x128xbf16>, vector<32x128xf32> -> vector<32x128xf32>
    %c0_15 = arith.constant 0 : index
    %c0_16 = arith.constant 0 : index
    %19 = vector.load %arg7[%c0_15, %c0_16] : memref<1x128xf32, #tpu.memory_space<vmem>>, vector<1x128xf32>
    %20 = vector.broadcast %19 : vector<1x128xf32> to vector<32x128xf32>
    %21 = arith.addf %18, %20 : vector<32x128xf32>
    %cst_17 = arith.constant dense<0xFF800000> : vector<32xf32>
    %22 = vector.multi_reduction <maximumf>, %21, %cst_17 [1] : vector<32x128xf32> to vector<32xf32>
    %23 = vector.shape_cast %22 : vector<32xf32> to vector<32x1xf32>
    %24 = vector.broadcast %23 : vector<32x1xf32> to vector<32x128xf32>
    %25 = arith.subf %21, %24 : vector<32x128xf32>
    %26 = math.exp %25 : vector<32x128xf32>
    %cst_18 = arith.constant dense<0.000000e+00> : vector<32xf32>
    %27 = vector.multi_reduction <add>, %26, %cst_18 [1] : vector<32x128xf32> to vector<32xf32>
    %28 = vector.shape_cast %27 : vector<32xf32> to vector<32x1xf32>
    %29 = tpu.reciprocal %28 {approx = true} : vector<32x1xf32> -> vector<32x1xf32>
    %30 = vector.broadcast %29 : vector<32x1xf32> to vector<32x128xf32>
    %31 = arith.mulf %26, %30 : vector<32x128xf32>
    %c0_19 = arith.constant 0 : index
    %c0_20 = arith.constant 0 : index
    %32 = vector.load %arg8[%c0_19, %c0_20] : memref<32x128xf32, #tpu.memory_space<vmem>>, vector<32x128xf32>
    tpu.vector_store %arg8[%c0_19, %c0_20], %31 {strides = array<i32>} : memref<32x128xf32, #tpu.memory_space<vmem>>, vector<32x128xf32>,
    return
  }
  func.func @transform_0(%arg0: i32) -> (i32, i32) {
    %c0_i32 = arith.constant 0 : i32
    %c0_i32_0 = arith.constant 0 : i32
    return %arg0, %c0_i32 : i32, i32
  }
  func.func @transform_1(%arg0: i32) -> (i32, i32) {
    %c0_i32 = arith.constant 0 : i32
    %c0_i32_0 = arith.constant 0 : i32
    %c0_i32_1 = arith.constant 0 : i32
    return %c0_i32, %c0_i32_0 : i32, i32
  }
  func.func @transform_2(%arg0: i32) -> (i32, i32) {
    %c0_i32 = arith.constant 0 : i32
    %c0_i32_0 = arith.constant 0 : i32
    %c0_i32_1 = arith.constant 0 : i32
    return %c0_i32, %c0_i32_0 : i32, i32
  }
  func.func @transform_3(%arg0: i32) -> (i32, i32) {
    %c0_i32 = arith.constant 0 : i32
    %c0_i32_0 = arith.constant 0 : i32
    %c0_i32_1 = arith.constant 0 : i32
    return %c0_i32, %c0_i32_0 : i32, i32
  }
  func.func @transform_4(%arg0: i32) -> (i32, i32) {
    %c0_i32 = arith.constant 0 : i32
    %c0_i32_0 = arith.constant 0 : i32
    %c0_i32_1 = arith.constant 0 : i32
    return %c0_i32, %c0_i32_0 : i32, i32
  }
  func.func @transform_5(%arg0: i32) -> (i32, i32) {
    %c0_i32 = arith.constant 0 : i32
    %c0_i32_0 = arith.constant 0 : i32
    %c0_i32_1 = arith.constant 0 : i32
    return %c0_i32, %c0_i32_0 : i32, i32
  }
  func.func @transform_6(%arg0: i32) -> (i32, i32) {
    %c0_i32 = arith.constant 0 : i32
    %c0_i32_0 = arith.constant 0 : i32
    %c0_i32_1 = arith.constant 0 : i32
    return %c0_i32, %c0_i32_0 : i32, i32
  }
  func.func @transform_7(%arg0: i32) -> (i32, i32) {
    %c0_i32 = arith.constant 0 : i32
    %c0_i32_0 = arith.constant 0 : i32
    return %arg0, %c0_i32 : i32, i32
  }
}

</mosaic_0001>

<bundles_post_ra>
// kernel: tpu_custom_call.1
= control target key start
LH: loop header
LB: loop body
LE: loop exit
PB: predicated region body
PF: predicated region fallthrough
CT: control target
= control target key end

     0   :  { %s1607_s0 = inlined_call_operand.hbm [shape: bf16[64,128], index: 0, kind: input, shape index: {}]   ;;  %s1608_s1 = inlined_call_operand.hbm [shape: bf16[128,128], index: 1, kind: input, shape index: {}]   ;;  %s1609_s2 = inlined_call_operand.vmem [shape: f32[1,128], index: 2, kind: input, shape index: {}]   ;;  %s1610_s3 = inlined_call_operand.hbm [shape: bf16[128,128], index: 3, kind: input, shape index: {}]   ;;  %s1611_s4 = inlined_call_operand.vmem [shape: f32[1,128], index: 4, kind: input, shape index: {}]   ;;  %s1612_s5 = inlined_call_operand.hbm [shape: bf16[128,128], index: 5, kind: input, shape index: {}]   ;;  %s1613_s6 = inlined_call_operand.vmem [shape: f32[1,128], index: 6, kind: input, shape index: {}]   ;;  %s1614_s7 = inlined_call_operand.hbm [shape: f32[64,128], index: 7, kind: output, shape index: {}]  }
   0x1   :  { %1621 = sst [smem:[#allocation15_spill]] %s1608_s1 }
   0x2   :  { %12 = vsyncpa [#allocation3], 0 }
   0x3   :  { %14 = vsyncpa [#allocation3 + $0x1], 0 }
   0x4   :  { %15 = vsyncpa [#allocation6], 0 }
   0x5   :  { %16 = vsyncpa [#allocation9], 0 }
   0x6   :  { %17 = vsyncpa [#allocation4], 0 }
   0x7   :  { %19 = vsyncpa [#allocation4 + $0x1], 0  ;;  %s1381_s24 = smov 0   ;;  %s1383_s25 = smov 0  }
   0x8   :  { %s1385_s26 = smov 0   ;;  %s1387_s27 = smov 0  }
   0x9 LB: > { %s1402_s28 = sadd.s32 4294967295, %s1330_s27   ;;  %s888_s29 = sadd.s32 4294967294, %s1330_s27   ;;  %s1330_s27 = sphi %s1387_s27, %s1643_s27   ;;  %s1326_s26 = sphi %s1385_s26, %s1642_s26   ;;  %s1322_s25 = sphi %s1383_s25, %s1641_s25   ;;  %s1318_s24 = sphi %s1381_s24, %s1640_s24  }
   0xa   : > { %p45_p0 = scmp.ne.s32.totalorder %s1322_s25, %s1318_s24  ;;  %p1615_p1 = scmp.eq.s32.totalorder %s1402_s28, 0 }
   0xb   : > { %p195_p2 = scmp.eq.s32.totalorder %s1402_s28, 1  ;;  %p201_p3 = scmp.eq.s32.totalorder %s888_s29, 1 }
   0xc   : > { %p1411_p4 = por %p1615_p1, %p45_p0  ;;  %p889_p5 = scmp.ge.s32.totalorder %s1330_s27, 1 }
   0xd   : > { %p1416_p6 = por %p201_p3, %p45_p0  ;;  %p208_p7 = scmp.lt.s32.totalorder %s1330_s27, 3 }
   0xe   : > { %s1622_s30 = scalar_select %p1411_p4, 1, 0 }
   0xf   : > { %s1623_s8 = scalar_select %p1416_p6, 1, 0 }
  0x10   : > { %p1421_p8 = pnand %p889_p5, %p208_p7  ;;  %s1332_s10 = smov [#allocation5]  }
  0x11   : > { %s220_s11 = sshll.u32 %s1332_s10, 4  ;;  %s1333_s13 = smov [#allocation7]   ;;  %s221_s11 = int_to_ptr.vmem [resolvable:$true] %s220_s11 }
  0x12   : > { %s1624_s9 = scalar_select %p1421_p8, 1, 0 }
  0x13   : > { %p1045_p9 = pneg %p1421_p8  ;;  %s236_s14 = sshll.u32 %s1333_s13, 4  ;;  %s237_s14 = int_to_ptr.vmem [resolvable:$true] %s236_s14 }
  0x14   : > { %s1334_s15 = smov [#allocation8]   ;;  %s1163_s17 = scalar_lea.vmem %s221_s11, 1024 }
  0x15   : > { %p1430_p11 = pnand %p1045_p9, %p1615_p1  ;;  %s252_s16 = sshll.u32 %s1334_s15, 4  ;;  %s253_s16 = int_to_ptr.vmem [resolvable:$true] %s252_s16 }
  0x16   : > { %p1164_p13 = scmp.ne.s32.totalorder %s221_s11, %s1163_s17  ;;  %p1171_p5 = scmp.lt.s32.totalorder %s221_s11, %s221_s11 }
  0x17   : > { %p1154_p12 = pneg %p1430_p11  ;;  %p1172_p7 = scmp.lt.s32.totalorder %s1163_s17, %s1163_s17 }
  0x19   : > { %p1166_p0 = pnand %p1164_p13, %p1154_p12  ;;  %p1173_p9 = por %p1172_p7, %p1171_p5 }
  0x1b   : > { %p1167_p3 = pneg %p1166_p0 }
  0x1d   : > { %p1174_p10 = pnand %p1173_p9, %p1167_p3 }
  0x1f   : > { %1177 = shalt.err (!%p1174_p10)
}
  0x20   : > { %s1616_s18 = smov 64   ;;  %s1617_s19 = smov 4  }
  0x21   : > { %s1626_s1 = sld [smem:[#allocation15_spill]]  ;;  %s1189_s22 = scalar_lea.vmem %s237_s14, 1024 }
  0x22   : > { %p1190_p13 = scmp.ne.s32.totalorder %s237_s14, %s1189_s22  ;;  %p1197_p3 = scmp.lt.s32.totalorder %s237_s14, %s237_s14 }
  0x23   : > { %p1198_p10 = scmp.lt.s32.totalorder %s1189_s22, %s1189_s22 }
  0x24   : > { %p1192_p0 = pnand %p1190_p13, %p1154_p12 }
  0x25   : > { %p1199_p7 = por %p1198_p10, %p1197_p3 }
  0x26   : > { %p1193_p5 = pneg %p1192_p0 }
  0x27   : > { %1048 = dma.hbm_to_vmem [thread:$0]  (!%p1430_p11), %s1626_s1, 1024, %s221_s11, [#allocation6], %s1616_s18, %s1616_s18, %s1617_s19  }
  0x28   : > { %p1200_p9 = pnand %p1199_p7, %p1193_p5 }
  0x2a   : > { %1203 = shalt.err (!%p1200_p9)
}
  0x2b   : > { %1051 = dma.hbm_to_vmem [thread:$0]  (!%p1430_p11), %s1610_s3, 1024, %s237_s14, [#allocation6], %s1616_s18, %s1616_s18, %s1617_s19  }
  0x2c   : > { %s1215_s10 = scalar_lea.vmem %s253_s16, 1024  ;;  %p1223_p3 = scmp.lt.s32.totalorder %s253_s16, %s253_s16 }
  0x2d   : > { %p1216_p1 = scmp.ne.s32.totalorder %s253_s16, %s1215_s10  ;;  %p1224_p5 = scmp.lt.s32.totalorder %s1215_s10, %s1215_s10 }
  0x2f   : > { %p1218_p13 = pnand %p1216_p1, %p1154_p12  ;;  %p1225_p10 = por %p1224_p5, %p1223_p3 }
  0x31   : > { %p1219_p0 = pneg %p1218_p13 }
  0x33   : > { %p1226_p7 = pnand %p1225_p10, %p1219_p0 }
  0x35   : > { %1229 = shalt.err (!%p1226_p7)
}
  0x36   : > { %1054 = dma.hbm_to_vmem [thread:$0]  (!%p1430_p11), %s1612_s5, 1024, %s253_s16, [#allocation9], %s1616_s18, %s1616_s18, %s1617_s19  }
  0x37   : > { %s1470_s14 = sadd.s32 1, %s1330_s27   ;;  %s32_s15 = sadd.s32 1, %s1326_s26 }
  0x38   : > { %s29_s12 = ssub.s32 %s1330_s27, %s1470_s14  ;;  %p39_p12 = scmp.ne.s32.totalorder %s1326_s26, %s1322_s25 }
  0x39   : > { %p30_p1 = scmp.eq.s32.totalorder %s29_s12, 0  ;;  %p40_p9 = scmp.eq.s32.totalorder %s1330_s27, 0 }
  0x3a   : > { %p1066_p13 = scmp.lt.s32.totalorder %s1330_s27, 2  ;;  %p1484_p3 = por %p195_p2, %p39_p12 }
  0x3b   : > { %s1480_s17 = scalar_select %p30_p1, %s1326_s26, %s32_s15  }
  0x3c   : > { %p41_p0 = por %p40_p9, %p39_p12  ;;  %s269_s21 = sand.u32 1, %s1326_s26  }
  0x3d   : > { %s1627_s20 = scalar_select %p1484_p3, 1, 0 }
  0x3e   : > { %s937_s22 = sshll.u32 %s1330_s27, 8  ;;  %s894_s16 = sshll.u32 %s269_s21, 4 }
  0x3f   : > { %s1493_s10 = scalar_lea.hbm %s1607_s0, %s937_s22  ;;  %s273_s11 = scalar_lea.vmem [#allocation2], %s894_s16 }
  0x40   : > { %s280_s13 = sshll.u32 %s273_s11, 4  ;;  %p1495_p11 = pnand %p1066_p13, %p41_p0  ;;  %s1499_s13 = int_to_ptr.vmem [resolvable:$true] %s280_s13 }
  0x41   : > { %s1501_s15 = scalar_lea.sflag [#allocation3], %s269_s21  ;;  %s1230_s18 = scalar_lea.hbm %s1493_s10, 256 }
  0x42   : > { %p1231_p2 = scmp.ne.s32.totalorder %s1493_s10, %s1230_s18  ;;  %p1232_p5 = pneg %p1495_p11 }
  0x43   : > { %s1235_s16 = scalar_lea.hbm %s1607_s0, 512  ;;  %p1236_p1 = scmp.lt.s32.totalorder %s1493_s10, %s1607_s0 }
  0x44   : > { %p1233_p10 = pnand %p1232_p5, %p1231_p2  ;;  %p1237_p12 = scmp.lt.s32.totalorder %s1235_s16, %s1230_s18 }
  0x46   : > { %p1234_p7 = pneg %p1233_p10  ;;  %p1238_p9 = por %p1237_p12, %p1236_p1 }
  0x48   : > { %p1239_p13 = pnand %p1238_p9, %p1234_p7 }
  0x4a   : > { %1242 = shalt.err (!%p1239_p13)
}
  0x4b   : > { %s1243_s21 = scalar_lea.vmem %s1499_s13, 256  ;;  %s1337_s19 = smov [#allocation2]  }
  0x4c   : > { %p1244_p0 = scmp.ne.s32.totalorder %s1499_s13, %s1243_s21  ;;  %s1248_s1 = sshll.u32 %s1337_s19, 4  ;;  %s1249_s1 = int_to_ptr.vmem [resolvable:$false] %s1248_s1 }
  0x4d   : > { %s1250_s22 = scalar_lea.vmem %s1249_s1, 512  ;;  %p1251_p10 = scmp.lt.s32.totalorder %s1499_s13, %s1249_s1 }
  0x4e   : > { %p1246_p6 = pnand %p1244_p0, %p1232_p5  ;;  %p1252_p3 = scmp.lt.s32.totalorder %s1250_s22, %s1243_s21 }
  0x50   : > { %p1247_p2 = pneg %p1246_p6  ;;  %p1253_p4 = por %p1252_p3, %p1251_p10 }
  0x52   : > { %p1254_p8 = pnand %p1253_p4, %p1247_p2 }
  0x54   : > { %1257 = shalt.err (!%p1254_p8)
}
  0x55   : > { %s1629_s18 = smov 4   ;;  %s1630_s23 = smov 64  }
  0x56   : > { %1058 = dma.hbm_to_vmem [thread:$0]  (!%p1495_p11), %s1493_s10, 256, %s1499_s13, %s1501_s15, %s1630_s23, %s1630_s23, %s1629_s18  }
  0x57   : > { %p1631_p6 = scmp.ne.s32.totalorder %s1624_s9, 0 }
  0x58   : > { %s1528_s19 = sand.u32 (!%p1631_p6), 1, %s1322_s25   ;;  %p1632_p4 = scmp.ne.s32.totalorder (!%p1631_p6), %s1622_s30, 0 }
  0x59   : > { %292 = sbr.rel (%p1631_p6) target bundleno = 1076 (0x434), region = 48  ;;  %s898_s1 = sshll.u32 (!%p1631_p6), %s1528_s19, 4 }
  0x5a   : > { %s295_s16 = scalar_lea.sflag (!%p1631_p6), [#allocation3], %s1528_s19  ;;  %s1532_s29 = scalar_lea.vmem (!%p1631_p6), [#allocation2], %s898_s1 }
  0x5e   : > { %1301 = dma.done.wait (%p1632_p4), %s295_s16, 256  }
  0x5f   : > { %1303 = vsyncadd (%p1632_p4), %s295_s16, 4294967040  ;;  %p1633_p8 = scmp.eq.s32.totalorder %s1402_s28, 0 }
  0x61   : > { %1305 = dma.done.wait (%p1633_p8), [#allocation6], 2048   ;;  %p1634_p3 = pmov %p1633_p8 }
  0x63   : > { %1307 = vsyncadd (%p1634_p3), [#allocation6], 4294965248  ;;  %p1635_p11 = pmov %p1634_p3 }
  0x64   : > { %p1636_p5 = pmov %p1634_p3 }
  0x65   : > { %1309 = dma.done.wait (%p1635_p11), [#allocation9], 1024  }
  0x66   : > { %1311 = vsyncadd (%p1636_p5), [#allocation9], 4294966272  ;;  %v1110_v0 = vld [vmem:[#allocation5 + $0x38] sm:$0xff]   ;;  %v1111_v1 = vld [vmem:[#allocation5 + $0x30] sm:$0xff]   ;;  %s902_s11 = sshll.u32 %s1528_s19, 5  ;;  %s938_s22 = sshll.u32 %s1402_s28, 9 }
  0x67   : > { %969 = vmatprep.subr.bf16.mxu0 %v1110_v0  ;;  %v1112_v2 = vld [vmem:[#allocation5 + $0x28] sm:$0xff]   ;;  %v1113_v3 = vld [vmem:[#allocation5 + $0x20] sm:$0xff]   ;;  %v1120_v5 = vld [vmem:[#allocation7 + $0x38] sm:$0xff]   ;;  %s340_s21 = scalar_lea.vmem [#allocation10], %s902_s11  ;;  %s1562_s16 = scalar_lea.hbm %s1614_s7, %s938_s22 }
  0x68   : > { %970 = vmatpush3.bf16.msra.mxu0 %v1110_v0  ;;  %v1118_v4 = vld [vmem:[%s1532_s29] sm:$0xff]   ;;  %v1114_v7 = vld [vmem:[#allocation5 + $0x18] sm:$0xff]   ;;  %989 = vmatprep.subr.bf16.mxu1 %v1120_v5  ;;  %v1122_v9 = vld [vmem:[#allocation7 + $0x28] sm:$0xff]   ;;  %s786_s18 = sshll.u32 %s340_s21, 4  ;;  %p1637_p1 = scmp.ne.s32.totalorder %s1627_s20, 0  ;;  %s1564_s18 = int_to_ptr.vmem [resolvable:$true] %s786_s18 }
  0x69   : > { %971 = vmatprep.subr.bf16.mxu0 %v1111_v1  ;;  %985 = vmatprep.mubr.bf16.mxu0 %v1118_v4  ;;  %v1121_v6 = vld [vmem:[#allocation7 + $0x30] sm:$0xff]   ;;  %v1123_v10 = vld [vmem:[#allocation7 + $0x20] sm:$0xff]   ;;  %v1116_v11 = vld [vmem:[#allocation5 + $0x8] sm:$0xff]   ;;  %s1258_s30 = scalar_lea.vmem %s1564_s18, 512  ;;  %s1338_s28 = smov [#allocation10]  }
  0x6a   : > { %990 = vmatpush3.bf16.msra.mxu1 %v1120_v5  ;;  %v1115_v8 = vld [vmem:[#allocation5 + $0x10] sm:$0xff]   ;;  %v1124_v12 = vld [vmem:[#allocation7 + $0x18] sm:$0xff]   ;;  %v1117_v13 = vld [vmem:[#allocation5] sm:$0xff]   ;;  %p1259_p7 = scmp.ne.s32.totalorder %s1564_s18, %s1258_s30  ;;  %s1262_s9 = sshll.u32 %s1338_s28, 4  ;;  %s1263_s9 = int_to_ptr.vmem [resolvable:$false] %s1262_s9 }
  0x6b   : > { %991 = vmatprep.subr.bf16.mxu1 %v1121_v6  ;;  %v1119_v14 = vld [vmem:[%s1532_s29 + $0x8] sm:$0xff]   ;;  %v1125_v15 = vld [vmem:[#allocation7 + $0x10] sm:$0xff]   ;;  %v1127_v17 = vld [vmem:[#allocation7] sm:$0xff]   ;;  %s773_s29 = scalar_lea.sflag [#allocation4], %s1528_s19  ;;  %s1264_s10 = scalar_lea.vmem %s1263_s9, 1024 }
  0x6c   : > { %972 = vmatpush3.bf16.msra.mxu0 %v1111_v1  ;;  %v1126_v16 = vld [vmem:[#allocation7 + $0x8] sm:$0xff]   ;;  %v1128_v18 = vld [vmem:[#allocation8 + $0x38] sm:$0xff]   ;;  %v1129_v19 = vld [vmem:[#allocation8 + $0x30] sm:$0xff]   ;;  %p1260_p12 = pnand %p1259_p7, %p1637_p1  ;;  %p1265_p13 = scmp.lt.s32.totalorder %s1564_s18, %s1263_s9 }
  0x6d   : > { %973 = vmatprep.subr.bf16.mxu0 %v1112_v2  ;;  %v1130_v20 = vld [vmem:[#allocation8 + $0x28] sm:$0xff]   ;;  %v1131_v21 = vld [vmem:[#allocation8 + $0x20] sm:$0xff]   ;;  %v1132_v22 = vld [vmem:[#allocation8 + $0x18] sm:$0xff]   ;;  %p1266_p0 = scmp.lt.s32.totalorder %s1264_s10, %s1258_s30 }
  0x6e   : > { %992 = vmatpush3.bf16.msra.mxu1 %v1121_v6  ;;  %v903_v25 = vld [vmem:[%s1609_s2] ss:$0 sm:$0xff]  ;;  %v1133_v38 = vld [vmem:[#allocation8 + $0x10] sm:$0xff]   ;;  %v1134_v39 = vld [vmem:[#allocation8 + $0x8] sm:$0xff]   ;;  %p1261_p9 = pneg %p1260_p12 }
  0x6f   : > { %993 = vmatprep.subr.bf16.mxu1 %v1122_v9  ;;  %v1135_v40 = vld [vmem:[#allocation8] sm:$0xff]   ;;  %p1267_p2 = por %p1266_p0, %p1265_p13 }
  0x70   : > { %974 = vmatpush3.bf16.msra.mxu0 %v1112_v2  ;;  %v914_v43 = vld [vmem:[%s1611_s4] ss:$0 sm:$0xff] }
  0x71   : > { %975 = vmatprep.subr.bf16.mxu0 %v1113_v3  ;;  %v923_v56 = vld [vmem:[%s1613_s6] ss:$0 sm:$0xff]  ;;  %p1268_p10 = pnand %p1267_p2, %p1261_p9 }
  0x72   : > { %994 = vmatpush3.bf16.msra.mxu1 %v1122_v9 }
  0x73   : > { %995 = vmatprep.subr.bf16.mxu1 %v1123_v10 }
  0x74   : > { %976 = vmatpush3.bf16.msra.mxu0 %v1113_v3 }
  0x75   : > { %977 = vmatprep.subr.bf16.mxu0 %v1114_v7 }
  0x76   : > { %996 = vmatpush3.bf16.msra.mxu1 %v1123_v10 }
  0x77   : > { %997 = vmatprep.subr.bf16.mxu1 %v1124_v12 }
  0x78   : > { %978 = vmatpush3.bf16.msra.mxu0 %v1114_v7 }
  0x79   : > { %979 = vmatprep.subr.bf16.mxu0 %v1115_v8 }
  0x7a   : > { %998 = vmatpush3.bf16.msra.mxu1 %v1124_v12 }
  0x7b   : > { %999 = vmatprep.subr.bf16.mxu1 %v1125_v15 }
  0x7c   : > { %980 = vmatpush3.bf16.msra.mxu0 %v1115_v8 }
  0x7d   : > { %981 = vmatprep.subr.bf16.mxu0 %v1116_v11 }
  0x7e   : > { %1000 = vmatpush3.bf16.msra.mxu1 %v1125_v15 }
  0x7f   : > { %1001 = vmatprep.subr.bf16.mxu1 %v1126_v16 }
  0x80   : > { %982 = vmatpush3.bf16.msra.mxu0 %v1116_v11 }
  0x81   : > { %983 = vmatprep.subr.bf16.mxu0 %v1117_v13 }
  0x82   : > { %1002 = vmatpush3.bf16.msra.mxu1 %v1126_v16 }
  0x83   : > { %1003 = vmatprep.subr.bf16.mxu1 %v1127_v17 }
  0x84   : > { %984 = vmatpush3.bf16.msra.mxu0 %v1117_v13 }
  0x85   : > { %1009 = vmatprep.subr.bf16.mxu0 %v1128_v18 }
  0x86   : > { %1004 = vmatpush3.bf16.msra.mxu1 %v1127_v17 }
  0x87   : > { %986 = vmatmul.mubr.bf16.vlgmr.msra.gmra.mxu0 %v1119_v14 }
  0x88   : > { %1010 = vmatpush3.bf16.msra.mxu0 %v1128_v18 }
  0x89   : > { %1011 = vmatprep.subr.bf16.mxu0 %v1129_v19 }
  0x8c   : > { %1012 = vmatpush3.bf16.msra.mxu0 %v1129_v19 }
  0x8d   : > { %1013 = vmatprep.subr.bf16.mxu0 %v1130_v20 }
  0x90   : > { %1014 = vmatpush3.bf16.msra.mxu0 %v1130_v20 }
  0x91   : > { %1015 = vmatprep.subr.bf16.mxu0 %v1131_v21 }
  0x94   : > { %1016 = vmatpush3.bf16.msra.mxu0 %v1131_v21 }
  0x95   : > { %1017 = vmatprep.subr.bf16.mxu0 %v1132_v22 }
  0x98   : > { %1018 = vmatpush3.bf16.msra.mxu0 %v1132_v22 }
  0x99   : > { %1019 = vmatprep.subr.bf16.mxu0 %v1133_v38 }
  0x9c   : > { %1020 = vmatpush3.bf16.msra.mxu0 %v1133_v38 }
  0x9d   : > { %1021 = vmatprep.subr.bf16.mxu0 %v1134_v39 }
  0xa0   : > { %1022 = vmatpush3.bf16.msra.mxu0 %v1134_v39 }
  0xa1   : > { %1023 = vmatprep.subr.bf16.mxu0 %v1135_v40 }
  0xa4   : > { %1024 = vmatpush3.bf16.msra.mxu0 %v1135_v40 }
 0x147   : > { %v987_v23 = vpop.f32.mrf.mxu0 }
 0x148   : > { %v474_v29 = vadd.f32 %v987_v23, %v903_v25 }
 0x149   : > { %v465_v24 = vpop.f32.mrf.mxu0 }
 0x14a   : > { %v466_v27 = vadd.f32 %v903_v25, %v465_v24  ;;  %v482_v35 = vmax.f32 %v474_v29, 0.0 }
 0x14b   : > { %v988_v26 = vpop.f32.mrf.mxu0 }
 0x14c   : > { %v477_v28 = vadd.f32 %v988_v26, %v903_v25  ;;  %v480_v33 = vmax.f32 %v466_v27, 0.0 }
 0x14d   : > { %v468_v30 = vpop.f32.mrf.mxu0 }
 0x14e   : > { %v469_v31 = vadd.f32 %v903_v25, %v468_v30  ;;  %v483_v32 = vmax.f32 %v477_v28, 0.0 }
 0x150   : > { %v481_v34 = vmax.f32 %v469_v31, 0.0  ;;  %v485_v37 = vpack.c.bf16 %v483_v32, %v482_v35 }
 0x152   : > { %v484_v36 = vpack.c.bf16 %v481_v34, %v480_v33 }
 0x154   : > { %1005 = vmatprep.mubr.bf16.mxu1 %v484_v36 }
 0x155   : > { %1006 = vmatmul.mubr.bf16.vlgmr.msra.gmra.mxu1 %v485_v37 }
 0x215   : > { %v1007_v41 = vpop.f32.mrf.mxu1 }
 0x216   : > { %v600_v47 = vadd.f32 %v1007_v41, %v914_v43 }
 0x217   : > { %v591_v42 = vpop.f32.mrf.mxu1 }
 0x218   : > { %v592_v45 = vadd.f32 %v914_v43, %v591_v42  ;;  %v608_v53 = vmax.f32 %v600_v47, 0.0 }
 0x219   : > { %v1008_v44 = vpop.f32.mrf.mxu1 }
 0x21a   : > { %v603_v46 = vadd.f32 %v1008_v44, %v914_v43  ;;  %v606_v51 = vmax.f32 %v592_v45, 0.0 }
 0x21b   : > { %v594_v48 = vpop.f32.mrf.mxu1 }
 0x21c   : > { %v595_v49 = vadd.f32 %v914_v43, %v594_v48  ;;  %v609_v50 = vmax.f32 %v603_v46, 0.0 }
 0x21e   : > { %v607_v52 = vmax.f32 %v595_v49, 0.0  ;;  %v611_v55 = vpack.c.bf16 %v609_v50, %v608_v53 }
 0x220   : > { %v610_v54 = vpack.c.bf16 %v607_v52, %v606_v51 }
 0x222   : > { %1025 = vmatprep.mubr.bf16.mxu0 %v610_v54 }
 0x223   : > { %1026 = vmatmul.mubr.bf16.vlgmr.msra.gmra.mxu0 %v611_v55 }
 0x2e3   : > { %v1027_v57 = vpop.f32.mrf.mxu0 }
 0x2e4   : > { %v726_v58 = vadd.f32 %v1027_v57, %v923_v56 }
 0x2e5   : > { %v717_v59 = vpop.f32.mrf.mxu0 }
 0x2e6   : > { %v718_v60 = vadd.f32 %v923_v56, %v717_v59  ;;  %736 = vmax.xlane.f32.xlu1 %v726_v58 }
 0x2e7   : > { %v1028_v61 = vpop.f32.mrf.mxu0 }
 0x2e8   : > { %v729_v62 = vadd.f32 %v1028_v61, %v923_v56  ;;  %732 = vmax.xlane.f32.xlu0 %v718_v60 }
 0x2e9   : > { %v720_v63 = vpop.f32.mrf.mxu0 }
 0x2ea   : > { %v721_v0 = vadd.f32 %v923_v56, %v720_v63  ;;  %738 = vmax.xlane.f32.xlu1 %v729_v62 }
 0x2ec   : > { %734 = vmax.xlane.f32.xlu0 %v721_v0 }
 0x36f   : > { %v737_v1 = vpop.xlane.xlu1 %736 }
 0x370   : > { %v742_v2 = vsub.f32 %v726_v58, %v737_v1 }
 0x371   : > { %v733_v3 = vpop.xlane.xlu0 %732 }
 0x372   : > { %v740_v4 = vsub.f32 %v718_v60, %v733_v3  ;;  %v748_v7 = vmul.f32 1.442695, %v742_v2 }
 0x373   : > { %v739_v5 = vpop.xlane.xlu1 %738 }
 0x374   : > { %v744_v6 = vmul.f32 1.442695, %v740_v4  ;;  %v743_v9 = vsub.f32 %v729_v62, %v739_v5 }
 0x375   : > { %v735_v8 = vpop.xlane.xlu0 %734 }
 0x376   : > { %1136 = vpow2.f32 %v744_v6  ;;  %v741_v10 = vsub.f32 %v721_v0, %v735_v8  ;;  %v750_v12 = vmul.f32 1.442695, %v743_v9 }
 0x377   : > { %1138 = vpow2.f32 %v748_v7 }
 0x378   : > { %v746_v11 = vmul.f32 1.442695, %v741_v10 }
 0x37a   : > { %1140 = vpow2.f32 %v746_v11 }
 0x37b   : > { %1142 = vpow2.f32 %v750_v12 }
 0x383   : > { %v1137_v13 = vpop.eup %1136 }
 0x384   : > { %752 = vadd.xlane.f32.xlu0 %v1137_v13  ;;  %v1139_v14 = vpop.eup %1138 }
 0x387   : > { %v1141_v15 = vpop.eup %1140 }
 0x388   : > { %756 = vadd.xlane.f32.xlu0 %v1139_v14  ;;  %754 = vadd.xlane.f32.xlu1 %v1141_v15  ;;  %v1143_v16 = vpop.eup %1142 }
 0x38c   : > { %758 = vadd.xlane.f32.xlu1 %v1143_v16 }
 0x40d   : > { %v753_v17 = vpop.xlane.xlu0 %752 }
 0x40e   : > { %1144 = vrcp.f32 %v753_v17 }
 0x411   : > { %v755_v18 = vpop.xlane.xlu1 %754  ;;  %v757_v19 = vpop.xlane.xlu0 %756 }
 0x412   : > { %1146 = vrcp.f32 %v755_v18 }
 0x413   : > { %1148 = vrcp.f32 %v757_v19 }
 0x415   : > { %v759_v20 = vpop.xlane.xlu1 %758 }
 0x416   : > { %1150 = vrcp.f32 %v759_v20 }
 0x41b   : > { %v1145_v21 = vpop.eup %1144 }
 0x41c   : > { %v764_v22 = vmul.f32 %v1145_v21, %v1137_v13 }
 0x41e   : > { %768 = vst [vmem:[%s340_s21] sm:$0xff] %v764_v22 }
 0x41f   : > { %v1147_v23 = vpop.eup %1146 }
 0x420   : > { %v1149_v24 = vpop.eup %1148  ;;  %v765_v25 = vmul.f32 %v1147_v23, %v1141_v15 }
 0x421   : > { %v766_v26 = vmul.f32 %v1149_v24, %v1139_v14 }
 0x422   : > { %769 = vst [vmem:[%s340_s21 + $0x8] sm:$0xff] %v765_v25 }
 0x423   : > { %v1151_v27 = vpop.eup %1150  ;;  %770 = vst [vmem:[%s340_s21 + $0x10] sm:$0xff] %v766_v26 }
 0x424   : > { %v767_v28 = vmul.f32 %v1151_v27, %v1143_v16 }
 0x426   : > { %771 = vst [vmem:[%s340_s21 + $0x18] sm:$0xff] %v767_v28 }
 0x427   : > { %1271 = shalt.err (!%p1268_p10)
}
 0x428   : > { %s1272_s13 = scalar_lea.hbm %s1562_s16, 512  ;;  %s1276_s11 = scalar_lea.hbm %s1614_s7, 1024 }
 0x429   : > { %p1273_p6 = scmp.ne.s32.totalorder %s1562_s16, %s1272_s13  ;;  %p1277_p3 = scmp.lt.s32.totalorder %s1562_s16, %s1614_s7 }
 0x42a   : > { %p1278_p11 = scmp.lt.s32.totalorder %s1276_s11, %s1272_s13 }
 0x42b   : > { %p1274_p4 = pnand %p1273_p6, %p1637_p1 }
 0x42c   : > { %p1279_p5 = por %p1278_p11, %p1277_p3 }
 0x42d   : > { %p1275_p8 = pneg %p1274_p4 }
 0x42f   : > { %p1280_p7 = pnand %p1279_p5, %p1275_p8 }
 0x431   : > { %1283 = shalt.err (!%p1280_p7)
}
 0x432   : > { %s1339_s23 = smov 128   ;;  %s1340_s1 = smov 8  }
 0x433   : > { %1043 = dma.vmem_to_hbm [thread:$0]  (%p1637_p1), %s1564_s18, 512, %s1562_s16, %s773_s29, %s1339_s23, %s1339_s23, %s1340_s1  }
 0x434 PF: > { %s801_s30 = sand.u32 1, %s1318_s24   ;;  %p1638_p12 = scmp.ne.s32.totalorder %s1623_s8, 0 }
 0x435   : > { %p1639_p9 = scmp.ge.s32.totalorder %s1330_s27, 2  ;;  %s802_s28 = scalar_lea.sflag [#allocation4], %s801_s30 }
 0x437   : > { %p1060_p13 = pnand %p1639_p9, %p1638_p12 }
 0x439   : > { %p1061_p0 = pneg %p1060_p13 }
 0x43b   : > { %1313 = dma.done.wait (%p1061_p0), %s802_s28, 512  }
 0x43c   : > { %1315 = vsyncadd (%p1061_p0), %s802_s28, 4294966784  ;;  %p22_p2 = scmp.ge.s32.totalorder %s1470_s14, 4   ;;  %s1640_s24 = smov %s1322_s25 }
 0x43d   : > { %s1641_s25 = smov %s1326_s26  ;;  %s1642_s26 = smov %s1480_s17 }
 0x43e   : > { %s1643_s27 = smov %s1470_s14  ;;  %24 = sbr.rel (!%p22_p2) target bundleno = 9 (0x9), region = 105 }
 0x443   :  { %807 = vsyncpa [#allocation3], 1 }
 0x444   :  { %809 = vsyncpa [#allocation3 + $0x1], 1 }
 0x445   :  { %810 = vsyncpa [#allocation6], 1 }
 0x446   :  { %811 = vsyncpa [#allocation9], 1 }
 0x447   :  { %812 = vsyncpa [#allocation4], 1 }
 0x448   :  { %814 = vsyncpa [#allocation4 + $0x1], 1 }

</bundles_post_ra>
